<compile_context>
chip_gen: v6e
topology: v6e:2x2x1
jax: 0.10.0
libtpu: 0.0.40
codegen_flags: <defaults>
</compile_context>

<pallas_src>
import jax
import jax.numpy as jnp
from jax.experimental import pallas as pl
from jax.experimental.pallas import tpu as pltpu


def _round_up(x, m):
    return ((x + m - 1) // m) * m


def _vmem_budget_bytes():
    """Generation-aware (tile budget, scoped vmem limit) in bytes."""
    cap = 128 * 1024 * 1024
    try:
        cap = int(getattr(pltpu.get_tpu_info(), "vmem_capacity_bytes", cap))
    except Exception:
        pass
    if cap >= 96 * 1024 * 1024:          # v5e / v6e: 128 MiB physical VMEM
        return 28 * 1024 * 1024, 64 * 1024 * 1024
    # v7x: 64 MiB physical per TensorCore -> stay comfortably clear.
    return 18 * 1024 * 1024, 40 * 1024 * 1024


def _choose_r_blk(R, max_rblk):
    """Pick a row block (multiple of 8 or full extent) favouring:
       1) an even number of row blocks (v7x: 2 TensorCores),
       2) an exact divisor of R (no row mask),
       3) the largest block that fits the VMEM budget."""
    if R < 16:
        return R if R <= max_rblk else max_rblk
    cap = max(8, min(max_rblk, _round_up(pl.cdiv(R, 2), 8)))
    best = None
    rb = cap
    while rb >= 8:
        nr = pl.cdiv(R, rb)
        if nr % 2 == 0:
            if R % rb == 0:
                return rb            # even NR and exact divisor: ideal
            if best is None:
                best = rb            # even NR, ragged row edge
        rb -= 8
    return best if best is not None else cap


def _as_2d(x):
    if x.ndim == 2:
        return x
    if x.ndim > 2:
        return x.reshape(-1, x.shape[-1])
    return x.reshape(1, -1)


def _make_kernel(R, T, R_BLK, T_TILE, multi_col, inv_mel, inv_gate,
                 needs_r_mask, needs_t_mask):
    fold = (R_BLK % 8 == 0) and (R_BLK > 8)

    def _tile_sq(mel_o_ref, mel_p_ref, mel_t_ref, r, c):
        tgt = mel_t_ref[...].astype(jnp.float32)
        d1 = mel_o_ref[...].astype(jnp.float32) - tgt
        d2 = mel_p_ref[...].astype(jnp.float32) - tgt
        sq = d1 * d1 + d2 * d2
        if needs_r_mask:   # static: emitted only when the row edge is ragged
            rows = jax.lax.broadcasted_iota(jnp.int32, (R_BLK, 1), 0)
            sq = jnp.where(rows < R - r * R_BLK, sq, 0.0)
        if needs_t_mask:   # static: emitted only when the column edge is ragged
            cols = jax.lax.broadcasted_iota(jnp.int32, (1, T_TILE), 1)
            sq = jnp.where(cols < T - c * T_TILE, sq, 0.0)
        if fold:
            # Fold aligned 8-row sublane groups into one (8, T_TILE) slab
            # (pairwise tree of VPU adds; slices never cross (8,128) tiles).
            parts = [sq[g * 8:(g + 1) * 8, :] for g in range(R_BLK // 8)]
            while len(parts) > 1:
                nxt = [parts[i] + parts[i + 1]
                       for i in range(0, len(parts) - 1, 2)]
                if len(parts) % 2 == 1:
                    nxt.append(parts[-1])
                parts = nxt
            sq = parts[0]
        return sq

    def _gate_bce(gate_o_ref, gate_t_ref):
        # Numerically stable BCE-with-logits, mean over all gate elements.
        x = gate_o_ref[...].astype(jnp.float32)
        z = gate_t_ref[...].astype(jnp.float32)
        bce = jnp.maximum(x, 0.0) - x * z + jnp.log1p(jnp.exp(-jnp.abs(x)))
        return jnp.sum(bce) * jnp.float32(inv_gate)

    if not multi_col:
        # One column step per row block: no running accumulator needed.
        def kernel(mel_o_ref, mel_p_ref, mel_t_ref, gate_o_ref, gate_t_ref,
                   out_ref):
            r = pl.program_id(0)
            sq = _tile_sq(mel_o_ref, mel_p_ref, mel_t_ref, r, 0)
            out_ref[...] = jnp.full((1, 8, 128),
                                    jnp.sum(sq) * jnp.float32(inv_mel),
                                    jnp.float32)

            @pl.when(r == 0)
            def _add_gate():
                out_ref[...] = out_ref[...] + _gate_bce(gate_o_ref, gate_t_ref)

        return kernel

    def kernel(mel_o_ref, mel_p_ref, mel_t_ref, gate_o_ref, gate_t_ref,
               out_ref, acc_ref):
        r = pl.program_id(0)
        c = pl.program_id(1)

        @pl.when(c == 0)
        def _init():
            acc_ref[...] = jnp.zeros_like(acc_ref)

        acc_ref[...] += _tile_sq(mel_o_ref, mel_p_ref, mel_t_ref, r, c)

        @pl.when(c == pl.num_programs(1) - 1)
        def _finalize():
            out_ref[...] = jnp.full((1, 8, 128),
                                    jnp.sum(acc_ref[...]) * jnp.float32(inv_mel),
                                    jnp.float32)

            @pl.when(r == 0)
            def _add_gate():
                out_ref[...] = out_ref[...] + _gate_bce(gate_o_ref, gate_t_ref)

    return kernel


def tacotron2_loss(model_output, targets):
    """model_output = (mel_out, mel_out_postnet, gate_out, _); targets = (mel_target, gate_target)."""
    mel_out, mel_out_postnet, gate_out, _ = model_output
    mel_target, gate_target = targets

    T = mel_out.shape[-1]
    R = mel_out.size // T
    mo = mel_out.reshape(R, T)
    mp = mel_out_postnet.reshape(R, T)
    mt = mel_target.reshape(R, T)

    # Keep gates 2-D (avoids the 8x sublane padding of a (1, N) block).
    g_o = _as_2d(gate_out)
    g_t = gate_target.reshape(g_o.shape)
    n_gate = g_o.size

    itemsize = max(x.dtype.itemsize for x in (mo, mp, mt))
    g_itemsize = max(g_o.dtype.itemsize, g_t.dtype.itemsize)
    stream_bpe = 3 * 2 * itemsize        # 3 streamed inputs x double buffer

    vmem_budget, vmem_limit = _vmem_budget_bytes()

    # Fixed VMEM overheads: resident gate blocks (2 arrays x 2 buffers, padded)
    # and the tiny lane-dense output block.
    gate_vmem = (2 * 2 * _round_up(g_o.shape[0], 8)
                 * _round_up(g_o.shape[1], 128) * g_itemsize)
    out_vmem = 2 * 8 * 128 * 4
    budget = max(vmem_budget - gate_vmem - out_vmem, 4 * 1024 * 1024)

    # ---- T first: prefer the full (contiguous) row, only tile T if forced ----
    T_pad = _round_up(T, 128)
    if 8 * T_pad * (stream_bpe + 4) <= budget:
        T_TILE = T                                   # full extent: NC == 1
    else:
        T_TILE = max(128, (budget // (8 * (stream_bpe + 4))) // 128 * 128)
    T_pad_tile = _round_up(T_TILE, 128)
    NC = pl.cdiv(T, T_TILE)

    # ---- then rows from what is left (reserve the (8, T_TILE) accumulator) ----
    rows_budget = max(budget - 8 * T_pad_tile * 4, T_pad_tile * stream_bpe * 8)
    max_rblk = max(8, (rows_budget // (T_pad_tile * stream_bpe)) // 8 * 8)
    R_BLK = _choose_r_blk(R, max_rblk)
    NR = pl.cdiv(R, R_BLK)

    needs_r_mask = (NR > 1) and (R % R_BLK != 0)
    needs_t_mask = (NC > 1) and (T % T_TILE != 0)

    inv_mel = 1.0 / float(R * T)
    inv_gate = 1.0 / float(n_gate)

    multi_col = NC > 1
    kernel = _make_kernel(R, T, R_BLK, T_TILE, multi_col, inv_mel, inv_gate,
                          needs_r_mask, needs_t_mask)

    mel_spec = pl.BlockSpec((R_BLK, T_TILE), lambda r, c: (r, c))
    gate_spec = pl.BlockSpec(tuple(g_o.shape), lambda r, c: (0, 0))   # resident
    out_spec = pl.BlockSpec((1, 8, 128), lambda r, c: (r, 0, 0))      # lane-dense

    acc_rows = 8 if R_BLK % 8 == 0 else R_BLK
    scratch = ([pltpu.VMEM((acc_rows, T_TILE), jnp.float32)]
               if multi_col else [])

    grid_spec = pltpu.PrefetchScalarGridSpec(
        num_scalar_prefetch=0,
        grid=(NR, NC),
        in_specs=[mel_spec, mel_spec, mel_spec, gate_spec, gate_spec],
        out_specs=out_spec,
        scratch_shapes=scratch,
    )

    cost = pl.CostEstimate(
        flops=int(5 * R * T + 8 * n_gate),
        transcendentals=int(2 * n_gate),
        bytes_accessed=int(3 * R * T * itemsize + 2 * n_gate * g_itemsize
                           + NR * 8 * 128 * 4),
    )

    partials = pl.pallas_call(
        kernel,
        out_shape=jax.ShapeDtypeStruct((NR, 8, 128), jnp.float32),
        grid_spec=grid_spec,
        compiler_params=pltpu.CompilerParams(
            dimension_semantics=("parallel", "arbitrary"),
            vmem_limit_bytes=vmem_limit,
        ),
        cost_estimate=cost,
    )(mo, mp, mt, g_o, g_t)

    # Tiny wrapper-side combine of the per-row-block partial losses.
    return jnp.sum(partials[:, 0, 0])


def _reference_loss(model_output, targets):
    mel_out, mel_out_postnet, gate_out, _ = model_output
    mel_target, gate_target = targets
    mel_loss = jnp.mean((mel_out - mel_target) ** 2) + \
               jnp.mean((mel_out_postnet - mel_target) ** 2)
    x = gate_out.reshape(-1).astype(jnp.float32)
    z = gate_target.reshape(-1).astype(jnp.float32)
    bce = jnp.maximum(x, 0.0) - x * z + jnp.log1p(jnp.exp(-jnp.abs(x)))
    return mel_loss + jnp.mean(bce)


if __name__ == "__main__":
    def _make_inputs(key, B, n_mel, T):
        k1, k2, k3, k4, k5 = jax.random.split(key, 5)
        mel_target = jax.random.normal(k1, (B, n_mel, T), dtype=jnp.float32)
        mel_out = jax.random.normal(k2, (B, n_mel, T), dtype=jnp.float32)
        mel_out_postnet = jax.random.normal(k3, (B, n_mel, T), dtype=jnp.float32)
        gate_out = jax.random.normal(k4, (B, T), dtype=jnp.float32)
        gate_target = (jax.random.uniform(k5, (B, T)) > 0.5).astype(jnp.float32)
        return (mel_out, mel_out_postnet, gate_out, None), (mel_target, gate_target)

    # Small case (module's toy shapes): single column step, even NR, no masks.
    model_output, targets = _make_inputs(jax.random.PRNGKey(0), B=2, n_mel=8, T=16)
    loss = tacotron2_loss(model_output, targets)
    jax.block_until_ready(loss)
    ref = _reference_loss(model_output, targets)
    assert jnp.allclose(loss, ref, rtol=1e-5, atol=1e-5), (loss, ref)

    # Ragged-row case: exercises the row mask + sublane-group fold path.
    model_output2, targets2 = _make_inputs(jax.random.PRNGKey(1), B=2, n_mel=10, T=1500)
    loss2 = tacotron2_loss(model_output2, targets2)
    jax.block_until_ready(loss2)
    ref2 = _reference_loss(model_output2, targets2)
    assert jnp.allclose(loss2, ref2, rtol=1e-5, atol=1e-5), (loss2, ref2)

    print("KERNEL_OK")
</pallas_src>

<mosaic_0001>
module attributes {stable_mosaic.version = 11 : i64} {
  func.func @kernel(%arg0: i32, %arg1: i32, %arg2: memref<8x16xf32, #tpu.memory_space<vmem>>, %arg3: memref<8x16xf32, #tpu.memory_space<vmem>>, %arg4: memref<8x16xf32, #tpu.memory_space<vmem>>, %arg5: memref<2x16xf32, #tpu.memory_space<vmem>>, %arg6: memref<2x16xf32, #tpu.memory_space<vmem>>, %arg7: memref<1x8x128xf32, #tpu.memory_space<vmem>>) attributes {dimension_semantics = [#tpu.dimension_semantics<parallel>, #tpu.dimension_semantics<arbitrary>], iteration_bounds = array<i64: 2, 1>, scalar_prefetch = 0 : i64, scratch_operands = 0 : i64, tpu.core_type = #tpu.core_type<tc>, window_params = [{transform_indices = @transform_0, window_bounds = array<i64: 8, 16>}, {transform_indices = @transform_1, window_bounds = array<i64: 8, 16>}, {transform_indices = @transform_2, window_bounds = array<i64: 8, 16>}, {pipeline_mode = #tpu.pipeline_mode<synchronous>, transform_indices = @transform_3, window_bounds = array<i64: 2, 16>}, {pipeline_mode = #tpu.pipeline_mode<synchronous>, transform_indices = @transform_4, window_bounds = array<i64: 2, 16>}, {transform_indices = @transform_5, window_bounds = array<i64: 1, 8, 128>}]} {
    %c0 = arith.constant 0 : index
    %c0_0 = arith.constant 0 : index
    %0 = vector.load %arg4[%c0, %c0_0] : memref<8x16xf32, #tpu.memory_space<vmem>>, vector<8x16xf32>
    %c0_1 = arith.constant 0 : index
    %c0_2 = arith.constant 0 : index
    %1 = vector.load %arg2[%c0_1, %c0_2] : memref<8x16xf32, #tpu.memory_space<vmem>>, vector<8x16xf32>
    %2 = arith.subf %1, %0 : vector<8x16xf32>
    %c0_3 = arith.constant 0 : index
    %c0_4 = arith.constant 0 : index
    %3 = vector.load %arg3[%c0_3, %c0_4] : memref<8x16xf32, #tpu.memory_space<vmem>>, vector<8x16xf32>
    %4 = arith.subf %3, %0 : vector<8x16xf32>
    %5 = arith.mulf %2, %2 : vector<8x16xf32>
    %6 = arith.mulf %4, %4 : vector<8x16xf32>
    %7 = arith.addf %5, %6 : vector<8x16xf32>
    %8 = vector.shape_cast %7 : vector<8x16xf32> to vector<1x8x16xf32>
    %cst = arith.constant dense<0.000000e+00> : vector<1xf32>
    %9 = vector.multi_reduction <add>, %8, %cst [1, 2] : vector<1x8x16xf32> to vector<1xf32>
    %10 = vector.shape_cast %9 : vector<1xf32> to vector<1x1x1xf32>
    %11 = vector.extract %10[0, 0, 0] : f32 from vector<1x1x1xf32>
    %cst_5 = arith.constant 3.906250e-03 : f32
    %12 = arith.mulf %11, %cst_5 : f32
    %13 = vector.broadcast %12 : f32 to vector<1x8x128xf32>
    %c0_6 = arith.constant 0 : index
    %c0_7 = arith.constant 0 : index
    %c0_8 = arith.constant 0 : index
    %14 = vector.load %arg7[%c0_6, %c0_7, %c0_8] : memref<1x8x128xf32, #tpu.memory_space<vmem>>, vector<1x8x128xf32>
    tpu.vector_store %arg7[%c0_6, %c0_7, %c0_8], %13 {strides = array<i32>} : memref<1x8x128xf32, #tpu.memory_space<vmem>>, vector<1x8x128xf32>,
    %c0_i32 = arith.constant 0 : i32
    %15 = arith.cmpi eq, %arg0, %c0_i32 : i32
    %16 = arith.extui %15 : i1 to i32
    %c0_i32_9 = arith.constant 0 : i32
    %17 = arith.cmpi ne, %16, %c0_i32_9 : i32
    scf.if %17 {
      %c0_10 = arith.constant 0 : index
      %c0_11 = arith.constant 0 : index
      %c0_12 = arith.constant 0 : index
      %18 = vector.load %arg7[%c0_10, %c0_11, %c0_12] : memref<1x8x128xf32, #tpu.memory_space<vmem>>, vector<1x8x128xf32>
      %c0_13 = arith.constant 0 : index
      %c0_14 = arith.constant 0 : index
      %19 = vector.load %arg5[%c0_13, %c0_14] : memref<2x16xf32, #tpu.memory_space<vmem>>, vector<2x16xf32>
      %c0_15 = arith.constant 0 : index
      %c0_16 = arith.constant 0 : index
      %20 = vector.load %arg6[%c0_15, %c0_16] : memref<2x16xf32, #tpu.memory_space<vmem>>, vector<2x16xf32>
      %cst_17 = arith.constant 0.000000e+00 : f32
      %21 = vector.broadcast %cst_17 : f32 to vector<2x16xf32>
      %22 = arith.maximumf %19, %21 : vector<2x16xf32>
      %23 = arith.mulf %19, %20 : vector<2x16xf32>
      %24 = arith.subf %22, %23 : vector<2x16xf32>
      %25 = math.absf %19 : vector<2x16xf32>
      %cst_18 = arith.constant 0.000000e+00 : f32
      %26 = vector.broadcast %cst_18 : f32 to vector<2x16xf32>
      %27 = arith.subf %26, %25 : vector<2x16xf32>
      %28 = math.exp %27 : vector<2x16xf32>
      %29 = math.log1p %28 : vector<2x16xf32>
      %30 = arith.addf %24, %29 : vector<2x16xf32>
      %31 = vector.shape_cast %30 : vector<2x16xf32> to vector<1x2x16xf32>
      %cst_19 = arith.constant dense<0.000000e+00> : vector<1xf32>
      %32 = vector.multi_reduction <add>, %31, %cst_19 [1, 2] : vector<1x2x16xf32> to vector<1xf32>
      %33 = vector.shape_cast %32 : vector<1xf32> to vector<1x1x1xf32>
      %34 = vector.extract %33[0, 0, 0] : f32 from vector<1x1x1xf32>
      %cst_20 = arith.constant 3.125000e-02 : f32
      %35 = arith.mulf %34, %cst_20 : f32
      %36 = vector.broadcast %35 : f32 to vector<1x8x128xf32>
      %37 = arith.addf %18, %36 : vector<1x8x128xf32>
      %c0_21 = arith.constant 0 : index
      %c0_22 = arith.constant 0 : index
      %c0_23 = arith.constant 0 : index
      %38 = vector.load %arg7[%c0_21, %c0_22, %c0_23] : memref<1x8x128xf32, #tpu.memory_space<vmem>>, vector<1x8x128xf32>
      tpu.vector_store %arg7[%c0_21, %c0_22, %c0_23], %37 {strides = array<i32>} : memref<1x8x128xf32, #tpu.memory_space<vmem>>, vector<1x8x128xf32>,
    } else {
    }
    return
  }
  func.func @transform_0(%arg0: i32, %arg1: i32) -> (i32, i32) {
    %c0_i32 = arith.constant 0 : i32
    return %arg0, %arg1 : i32, i32
  }
  func.func @transform_1(%arg0: i32, %arg1: i32) -> (i32, i32) {
    %c0_i32 = arith.constant 0 : i32
    return %arg0, %arg1 : i32, i32
  }
  func.func @transform_2(%arg0: i32, %arg1: i32) -> (i32, i32) {
    %c0_i32 = arith.constant 0 : i32
    return %arg0, %arg1 : i32, i32
  }
  func.func @transform_3(%arg0: i32, %arg1: i32) -> (i32, i32) {
    %c0_i32 = arith.constant 0 : i32
    %c0_i32_0 = arith.constant 0 : i32
    %c0_i32_1 = arith.constant 0 : i32
    return %c0_i32, %c0_i32_0 : i32, i32
  }
  func.func @transform_4(%arg0: i32, %arg1: i32) -> (i32, i32) {
    %c0_i32 = arith.constant 0 : i32
    %c0_i32_0 = arith.constant 0 : i32
    %c0_i32_1 = arith.constant 0 : i32
    return %c0_i32, %c0_i32_0 : i32, i32
  }
  func.func @transform_5(%arg0: i32, %arg1: i32) -> (i32, i32, i32) {
    %c0_i32 = arith.constant 0 : i32
    %c0_i32_0 = arith.constant 0 : i32
    %c0_i32_1 = arith.constant 0 : i32
    return %arg0, %c0_i32, %c0_i32_0 : i32, i32, i32
  }
}

</mosaic_0001>

<bundles_post_ra>
// kernel: tpu_custom_call.1
= control target key start
LH: loop header
LB: loop body
LE: loop exit
PB: predicated region body
PF: predicated region fallthrough
CT: control target
= control target key end

     0   :  { %s1043_s0 = inlined_call_operand.hbm [shape: f32[16,16], index: 0, kind: input, shape index: {}]   ;;  %s1044_s1 = inlined_call_operand.hbm [shape: f32[16,16], index: 1, kind: input, shape index: {}]   ;;  %s1045_s2 = inlined_call_operand.hbm [shape: f32[16,16], index: 2, kind: input, shape index: {}]   ;;  %s1046_s3 = inlined_call_operand.vmem [shape: f32[2,16], index: 3, kind: input, shape index: {}]   ;;  %s1047_s4 = inlined_call_operand.vmem [shape: f32[2,16], index: 4, kind: input, shape index: {}]   ;;  %s1048_s5 = inlined_call_operand.hbm [shape: f32[2,8,128], index: 5, kind: output, shape index: {}]  }
   0x1   :  { %1054 = sst [smem:[#allocation16_spill]] %s1044_s1 }
   0x2   :  { %10 = vsyncpa [#allocation3], 0 }
   0x3   :  { %12 = vsyncpa [#allocation3 + $0x1], 0 }
   0x4   :  { %13 = vsyncpa [#allocation6], 0 }
   0x5   :  { %15 = vsyncpa [#allocation6 + $0x1], 0 }
   0x6   :  { %16 = vsyncpa [#allocation4], 0 }
   0x7   :  { %18 = vsyncpa [#allocation4 + $0x1], 0  ;;  %s832_s18 = smov 0   ;;  %s834_s19 = smov 0  }
   0x8   :  { %s836_s20 = smov 0   ;;  %s838_s21 = smov 0  }
   0x9   :  { %s840_s22 = smov 0   ;;  %s842_s23 = smov 0  }
   0xa LB: > { %1055 = sst [smem:[#allocation12_spill]] %s792_s22  ;;  %s863_s24 = sadd.s32 4294967295, %s796_s23   ;;  %s796_s23 = sphi %s842_s23, %s24_s23   ;;  %s792_s22 = sphi %s840_s22, %s1071_s22   ;;  %s788_s21 = sphi %s838_s21, %s1070_s21   ;;  %s784_s20 = sphi %s836_s20, %s1074_s20   ;;  %s780_s19 = sphi %s834_s19, %s1073_s19   ;;  %s776_s18 = sphi %s832_s18, %s1072_s18  }
   0xb   : > { %1056 = sst [smem:[#allocation13_spill]] %s796_s23  ;;  %s529_s25 = sadd.s32 4294967294, %s796_s23  }
   0xc   : > { %s36_s26 = sadd.s32 1, %s792_s22  ;;  %s45_s27 = sadd.s32 1, %s784_s20 }
   0xd   : > { %p38_p0 = scmp.ge.s32.totalorder %s36_s26, 2  ;;  %p52_p1 = scmp.ne.s32.totalorder %s784_s20, %s780_s19 }
   0xe   : > { %p53_p2 = scmp.eq.s32.totalorder %s796_s23, 0  ;;  %p58_p3 = scmp.ne.s32.totalorder %s780_s19, %s776_s18 }
   0xf   : > { %s1076_s26 = smov (%p38_p0, %s36_s26), 0  ;;  %p59_p5 = scmp.eq.s32.totalorder %s863_s24, 0 }
  0x10   : > { %1057 = sst [smem:[#allocation14_spill]] %s1076_s26  ;;  %p875_p4 = por %p53_p2, %p52_p1 }
  0x11   : > { %s40_s29 = ssub.s32 %s792_s22, %s1076_s26  ;;  %p180_p6 = scmp.eq.s32.totalorder %s863_s24, 1 }
  0x12   : > { %p43_p7 = scmp.eq.s32.totalorder %s40_s29, 0  ;;  %p883_p8 = por %p59_p5, %p58_p3 }
  0x13   : > { %p887_p9 = por %p180_p6, %p52_p1  ;;  %p186_p10 = scmp.eq.s32.totalorder %s529_s25, 1 }
  0x14   : > { %s892_s7 = scalar_select %p43_p7, %s784_s20, %s45_s27  }
  0x15   : > { %p894_p11 = por %p186_p10, %p58_p3  ;;  %p574_p13 = scmp.lt.s32.totalorder %s796_s23, 2 }
  0x16   : > { %1061 = sst [smem:[#allocation15_spill]] %s892_s7  ;;  %s1049_s9 = sand.u32 1, %s784_s20  }
  0x17   : > { %s903_s10 = sshll.u32 %s1049_s9, 3  ;;  %s906_s11 = sshll.u32 %s792_s22, 7 }
  0x18   : > { %p910_p0 = pnand %p574_p13, %p875_p4  ;;  %s231_s13 = sand.u32 1, %s796_s23  }
  0x19   : > { %s1064_s1 = sld [smem:[#allocation16_spill]]  ;;  %s235_s17 = scalar_lea.vmem [#allocation5], %s903_s10 }
  0x1a   : > { %s243_s25 = sshll.u32 %s235_s17, 4  ;;  %p538_p1 = scmp.ge.s32.totalorder %s796_s23, 1  ;;  %s244_s25 = int_to_ptr.vmem [resolvable:$true] %s243_s25 }
  0x1b   : > { %p267_p2 = scmp.lt.s32.totalorder %s796_s23, 3  ;;  %s922_s27 = scalar_lea.sflag [#allocation6], %s231_s13 }
  0x1c   : > { %p630_p3 = pneg %p910_p0  ;;  %s641_s28 = scalar_lea.vmem %s244_s25, 128 }
  0x1d   : > { %p642_p4 = scmp.ne.s32.totalorder %s244_s25, %s641_s28  ;;  %s798_s29 = smov [#allocation5]  }
  0x1e   : > { %s646_s9 = sshll.u32 %s798_s29, 4  ;;  %s647_s9 = int_to_ptr.vmem [resolvable:$false] %s646_s9 }
  0x1f   : > { %s241_s16 = scalar_lea.hbm %s1064_s1, %s906_s11  ;;  %p644_p5 = pnand %p642_p4, %p630_p3 }
  0x20   : > { %s648_s14 = scalar_lea.vmem %s647_s9, 256  ;;  %p649_p7 = scmp.lt.s32.totalorder %s244_s25, %s647_s9 }
  0x21   : > { %p645_p6 = pneg %p644_p5  ;;  %p650_p10 = scmp.lt.s32.totalorder %s648_s14, %s641_s28 }
  0x23   : > { %p651_p13 = por %p650_p10, %p649_p7 }
  0x25   : > { %p652_p12 = pnand %p651_p13, %p645_p6 }
  0x27   : > { %655 = shalt.err (!%p652_p12)
}
  0x28   : > { %566 = dma.hbm_to_vmem [thread:$0]  (!%p910_p0), %s241_s16, 128, %s244_s25, %s922_s27  }
  0x29   : > { %p936_p4 = pnand %p538_p1, %p267_p2  ;;  %s222_s17 = scalar_lea.hbm %s1043_s0, %s906_s11 }
  0x2a   : > { %s216_s28 = scalar_lea.vmem [#allocation2], %s903_s10  ;;  %s260_s26 = scalar_lea.hbm %s1045_s2, %s906_s11 }
  0x2b   : > { %s224_s29 = sshll.u32 %s216_s28, 4  ;;  %s1066_s22 = sand.u32 1, %s784_s20   ;;  %s225_s29 = int_to_ptr.vmem [resolvable:$true] %s224_s29 }
  0x2c   : > { %s213_s7 = scalar_lea.sflag [#allocation3], %s1066_s22  ;;  %s669_s16 = scalar_lea.vmem %s225_s29, 128 }
  0x2d   : > { %p670_p12 = scmp.ne.s32.totalorder %s225_s29, %s669_s16  ;;  %s799_s25 = smov [#allocation2]  }
  0x2e   : > { %s674_s23 = sshll.u32 %s799_s25, 4  ;;  %s675_s23 = int_to_ptr.vmem [resolvable:$false] %s674_s23 }
  0x2f   : > { %p672_p1 = pnand %p670_p12, %p630_p3  ;;  %s676_s9 = scalar_lea.vmem %s675_s23, 256 }
  0x30   : > { %p677_p5 = scmp.lt.s32.totalorder %s225_s29, %s675_s23  ;;  %p678_p6 = scmp.lt.s32.totalorder %s676_s9, %s669_s16 }
  0x31   : > { %p673_p2 = pneg %p672_p1 }
  0x32   : > { %p679_p7 = por %p678_p6, %p677_p5 }
  0x34   : > { %p680_p10 = pnand %p679_p7, %p673_p2 }
  0x36   : > { %683 = shalt.err (!%p680_p10)
}
  0x37   : > { %563 = dma.hbm_to_vmem [thread:$0]  (!%p910_p0), %s222_s17, 128, %s225_s29, %s213_s7  }
  0x38   : > { %s254_s1 = scalar_lea.vmem [#allocation7], %s903_s10  ;;  %s800_s28 = smov [#allocation7]  }
  0x39   : > { %s262_s22 = sshll.u32 %s254_s1, 4  ;;  %s702_s23 = sshll.u32 %s800_s28, 4  ;;  %s263_s22 = int_to_ptr.vmem [resolvable:$true] %s262_s22  ;;  %s703_s23 = int_to_ptr.vmem [resolvable:$false] %s702_s23 }
  0x3a   : > { %s697_s15 = scalar_lea.vmem %s263_s22, 128  ;;  %s704_s14 = scalar_lea.vmem %s703_s23, 256 }
  0x3b   : > { %p698_p13 = scmp.ne.s32.totalorder %s263_s22, %s697_s15  ;;  %p705_p2 = scmp.lt.s32.totalorder %s263_s22, %s703_s23 }
  0x3c   : > { %p706_p5 = scmp.lt.s32.totalorder %s704_s14, %s697_s15 }
  0x3d   : > { %p700_p12 = pnand %p698_p13, %p630_p3 }
  0x3e   : > { %p707_p6 = por %p706_p5, %p705_p2 }
  0x3f   : > { %p701_p1 = pneg %p700_p12 }
  0x41   : > { %p708_p7 = pnand %p707_p6, %p701_p1 }
  0x43   : > { %711 = shalt.err (!%p708_p7)
}
  0x44   : > { %569 = dma.hbm_to_vmem [thread:$0]  (!%p910_p0), %s260_s26, 128, %s263_s22, %s922_s27  }
  0x45   : > { %271 = sbr.rel (%p936_p4) target bundleno = 563 (0x233), region = 40  ;;  %s971_s17 = sand.u32 (!%p936_p4), 1, %s780_s19  }
  0x46   : > { %s974_s29 = sshll.u32 (!%p936_p4), %s971_s17, 3  ;;  %s274_s12 = scalar_lea.sflag (!%p936_p4), [#allocation3], %s971_s17 }
  0x47   : > { %s277_s16 = scalar_lea.vmem (!%p936_p4), [#allocation2], %s974_s29 }
  0x4a   : > { %763 = dma.done.wait (%p883_p8), %s274_s12, 128  }
  0x4b   : > { %765 = vsyncadd (%p883_p8), %s274_s12, 4294967168  ;;  %s282_s26 = sand.u32 1, %s863_s24   ;;  %s286_s27 = scalar_lea.vmem [#allocation5], %s974_s29 }
  0x4c   : > { %s283_s11 = scalar_lea.sflag [#allocation6], %s282_s26 }
  0x4d   : > { %767 = dma.done.wait (%p883_p8), %s283_s11, 256  }
  0x4e   : > { %769 = vsyncadd (%p883_p8), %s283_s11, 4294967040  ;;  %s295_s13 = scalar_lea.vmem [#allocation7], %s974_s29  ;;  %v333_v1 = vld [vmem:[%s277_s16] sm:$0xff]  ;;  %v335_v2 = vld [vmem:[%s286_s27] sm:$0xff]  ;;  %vm340_vm0 = vcmask 130048   ;;  %s990_s25 = scalar_lea.vmem [#allocation8], %s974_s29 }
  0x4f   : > { %v332_v0 = vld [vmem:[%s295_s13] sm:$0xff]  ;;  %p543_p8 = scmp.ne.s32.totalorder %s788_s21, 0 }
  0x50   : > { %v334_v3 = vsub.f32 %v333_v1, %v332_v0  ;;  %v336_v4 = vsub.f32 %v335_v2, %v332_v0 }
  0x52   : > { %v337_v5 = vmul.f32 %v334_v3, %v334_v3  ;;  %v338_v6 = vmul.f32 %v336_v4, %v336_v4 }
  0x54   : > { %v339_v7 = vadd.f32 %v338_v6, %v337_v5 }
  0x56   : > { %v341_v8 = vsel %vm340_vm0, %v339_v7, 0.0 }
  0x57   : > { %342 = vadd.xlane.f32.xlu0 %v341_v8 }
  0xe0   : > { %v343_v9 = vpop.xlane.xlu0 %342 }
  0xe1   : > { %v344_v10 = vrot.slane %v343_v9, 4 }
  0xe3   : > { %v345_v11 = vadd.f32 %v344_v10, %v343_v9 }
  0xe5   : > { %v346_v12 = vrot.slane %v345_v11, 2 }
  0xe7   : > { %v347_v13 = vadd.f32 %v346_v12, %v345_v11 }
  0xe9   : > { %v348_v14 = vrot.slane %v347_v13, 1 }
  0xeb   : > { %v349_v15 = vadd.f32 %v348_v14, %v347_v13 }
  0xed   : > { %548 = vpush %v349_v15 }
 0x11e   : > { %s549_s24 = spop %548  ;;  %357 = sbr.rel (%p543_p8) target bundleno = 540 (0x21c), region = 56 }
 0x11f   : > { %s351_s30 = smul.f32 0.00390625, %s549_s24 }
 0x121   : > { %v352_v16 = vstv %s351_s30 }
 0x122   : > { %353 = vst [vmem:[%s990_s25] sm:$0xff] %v352_v16 }
 0x123   : > { %v359_v17 = vld [vmem:[%s1046_s3] sm:$0x3]  ;;  %vm378_vm2 = vcmask 123904  }
 0x124   : > { %v364_v18 = vand.u32 2147483647, %v359_v17  ;;  %v360_v24 = vld [vmem:[%s1047_s4] sm:$0x3]  ;;  %v361_v26 = vmax.f32 %v359_v17, 0.0 }
 0x125   : > { %v362_v27 = vmul.f32 %v360_v24, %v359_v17 }
 0x126   : > { %v365_v19 = vsub.f32 0.0, %v364_v18 }
 0x127   : > { %v363_v31 = vsub.f32 %v361_v26, %v362_v27 }
 0x128   : > { %v366_v20 = vmul.f32 1.442695, %v365_v19 }
 0x129   : > { %v358_v43 = vld [vmem:[%s990_s25] sm:$0xff] }
 0x12a   : > { %624 = vpow2.f32 %v366_v20 }
 0x137   : > { %v625_v21 = vpop.eup %624 }
 0x138   : > { %v368_v22 = vadd.f32 1.0, %v625_v21  ;;  %v371_v23 = vmul.f32 -0.5, %v625_v21  ;;  %v374_v28 = vand.u32 2147483647, %v625_v21 }
 0x13a   : > { %626 = vlog2.f32 %v368_v22  ;;  %v372_v25 = vadd.f32 1.0, %v371_v23  ;;  %vm375_vm1 = vcmp.lt.f32.partialorder %v374_v28, 0.0004427343 }
 0x13c   : > { %v373_v29 = vmul.f32 %v625_v21, %v372_v25 }
 0x147   : > { %v627_v30 = vpop.eup %626 }
 0x148   : > { %v370_v32 = vmul.f32 0.6931472, %v627_v30 }
 0x14a   : > { %v376_v33 = vsel %vm375_vm1, %v373_v29, %v370_v32 }
 0x14b   : > { %v377_v34 = vadd.f32 %v376_v33, %v363_v31 }
 0x14d   : > { %v379_v35 = vsel %vm378_vm2, %v377_v34, 0.0 }
 0x14e   : > { %380 = vadd.xlane.f32.xlu0 %v379_v35 }
 0x1d7   : > { %v381_v36 = vpop.xlane.xlu0 %380 }
 0x1d8   : > { %v382_v37 = vrot.slane %v381_v36, 4 }
 0x1da   : > { %v383_v38 = vadd.f32 %v382_v37, %v381_v36 }
 0x1dc   : > { %v384_v39 = vrot.slane %v383_v38, 2 }
 0x1de   : > { %v385_v40 = vadd.f32 %v384_v39, %v383_v38 }
 0x1e0   : > { %v386_v41 = vrot.slane %v385_v40, 1 }
 0x1e2   : > { %v387_v42 = vadd.f32 %v386_v41, %v385_v40 }
 0x1e4   : > { %550 = vpush %v387_v42 }
 0x215   : > { %s551_s28 = spop %550 }
 0x216   : > { %s389_s23 = smul.f32 0.03125, %s551_s28 }
 0x218   : > { %v390_v44 = vstv %s389_s23 }
 0x219   : > { %v391_v45 = vadd.f32 %v390_v44, %v358_v43 }
 0x21b   : > { %392 = vst [vmem:[%s990_s25] sm:$0xff] %v391_v45 }
 0x21c PF: > { %s545_s14 = sshll.u32 %s788_s21, 7  ;;  %s407_s12 = sshll.u32 %s990_s25, 4  ;;  %s408_s12 = int_to_ptr.vmem [resolvable:$true] %s407_s12 }
 0x21d   : > { %s405_s29 = scalar_lea.hbm %s1048_s5, %s545_s14  ;;  %s394_s16 = scalar_lea.sflag [#allocation4], %s971_s17 }
 0x21e   : > { %s712_s26 = scalar_lea.vmem %s408_s12, 128  ;;  %s801_s11 = smov [#allocation8]  }
 0x21f   : > { %p713_p0 = scmp.ne.s32.totalorder %s408_s12, %s712_s26  ;;  %s716_s27 = sshll.u32 %s801_s11, 4  ;;  %s717_s27 = int_to_ptr.vmem [resolvable:$false] %s716_s27 }
 0x220   : > { %s718_s13 = scalar_lea.vmem %s717_s27, 256  ;;  %p719_p10 = scmp.lt.s32.totalorder %s408_s12, %s717_s27 }
 0x221   : > { %p714_p3 = pnand %p713_p0, %p887_p9  ;;  %p720_p13 = scmp.lt.s32.totalorder %s718_s13, %s712_s26 }
 0x223   : > { %p715_p4 = pneg %p714_p3  ;;  %p721_p12 = por %p720_p13, %p719_p10 }
 0x225   : > { %p722_p1 = pnand %p721_p12, %p715_p4 }
 0x227   : > { %725 = shalt.err (!%p722_p1)
}
 0x228   : > { %s726_s21 = scalar_lea.hbm %s405_s29, 128  ;;  %s730_s30 = scalar_lea.hbm %s1048_s5, 256 }
 0x229   : > { %p727_p2 = scmp.ne.s32.totalorder %s405_s29, %s726_s21  ;;  %p731_p7 = scmp.lt.s32.totalorder %s405_s29, %s1048_s5 }
 0x22a   : > { %p732_p8 = scmp.lt.s32.totalorder %s730_s30, %s726_s21 }
 0x22b   : > { %p728_p5 = pnand %p727_p2, %p887_p9 }
 0x22c   : > { %p733_p0 = por %p732_p8, %p731_p7 }
 0x22d   : > { %p729_p6 = pneg %p728_p5 }
 0x22f   : > { %p734_p3 = pnand %p733_p0, %p729_p6 }
 0x231   : > { %737 = shalt.err (!%p734_p3)
}
 0x232   : > { %558 = dma.vmem_to_hbm [thread:$0]  (%p887_p9), %s408_s12, 128, %s405_s29, %s394_s16  }
 0x233 PF: > { %s1067_s1 = sld [smem:[#allocation13_spill]]  ;;  %s419_s22 = sand.u32 1, %s776_s18  }
 0x234   : > { %s420_s15 = scalar_lea.sflag [#allocation4], %s419_s22 }
 0x239   : > { %p1068_p4 = scmp.ge.s32.totalorder %s1067_s1, 2 }
 0x23b   : > { %p571_p10 = pnand %p1068_p4, %p894_p11 }
 0x23d   : > { %p572_p13 = pneg %p571_p10 }
 0x23f   : > { %771 = dma.done.wait (%p572_p13), %s420_s15, 128  }
 0x240   : > { %773 = vsyncadd (%p572_p13), %s420_s15, 4294967168  ;;  %s24_s23 = sadd.s32 1, %s1067_s1   ;;  %s1069_s28 = sld [smem:[#allocation15_spill]] }
 0x241   : > { %p21_p12 = scmp.ge.s32.totalorder %s24_s23, 4   ;;  %s1070_s21 = sld [smem:[#allocation12_spill]] }
 0x242   : > { %s1071_s22 = sld [smem:[#allocation14_spill]]  ;;  %s1072_s18 = smov %s780_s19 }
 0x243   : > { %s1073_s19 = smov %s784_s20  ;;  %23 = sbr.rel (!%p21_p12) target bundleno = 10 (0xa), region = 113 }
 0x246   : > { %s1074_s20 = smov %s1069_s28 }
 0x248   :  { %425 = vsyncpa [#allocation3], 1 }
 0x249   :  { %427 = vsyncpa [#allocation3 + $0x1], 1 }
 0x24a   :  { %428 = vsyncpa [#allocation6], 1 }
 0x24b   :  { %430 = vsyncpa [#allocation6 + $0x1], 1 }
 0x24c   :  { %431 = vsyncpa [#allocation4], 1 }
 0x24d   :  { %433 = vsyncpa [#allocation4 + $0x1], 1 }

</bundles_post_ra>
